<compile_context>
chip_gen: v6e
topology: v6e:2x2x1
jax: 0.10.0
libtpu: 0.0.40
codegen_flags: <defaults>
</compile_context>

<pallas_src>
import functools

import jax
import jax.numpy as jnp
from jax.experimental import pallas as pl
from jax.experimental.pallas import tpu as pltpu


def _round_up(x, m):
    return (x + m - 1) // m * m


# ---------------------------------------------------------------------------
# Core Pallas kernel: y = act(x @ w + b), single wide-K matmul on the MXU.
# x_ref: (TM, K) bf16   w_ref: (K, N) bf16   b_ref: (1, N) f32   o_ref: (TM, N)
# ---------------------------------------------------------------------------
def _mm_bias_act_kernel(x_ref, w_ref, b_ref, o_ref, *, act):
    acc = jnp.dot(x_ref[...], w_ref[...], preferred_element_type=jnp.float32)
    acc = acc + b_ref[...]                      # (1, N) broadcast, f32
    if act == "swish":
        y = acc * jax.nn.sigmoid(acc)           # stable sigmoid (EUP path)
    elif act == "leaky":
        y = jnp.where(acc >= 0.0, acc, jnp.float32(0.01) * acc)
    else:
        y = acc
    o_ref[...] = y.astype(o_ref.dtype)


def matmul_bias_act(x2d, w, b, act, out_dtype=jnp.bfloat16, tm=256):
    """act(x2d @ w + b); x2d: (M, K), w: (K, N), b: (N,). Lane-dense (M, N) out."""
    M, K = x2d.shape
    K2, N = w.shape
    assert K == K2, (K, K2)
    x2d = x2d.astype(jnp.bfloat16)
    w = w.astype(jnp.bfloat16)
    b = b.reshape(1, N).astype(jnp.float32)

    tm = min(tm, _round_up(M, 8))               # row tile, multiple of 8
    Mp = _round_up(M, tm)
    if Mp != M:
        x2d = jnp.pad(x2d, ((0, Mp - M), (0, 0)))

    out = pl.pallas_call(
        functools.partial(_mm_bias_act_kernel, act=act),
        out_shape=jax.ShapeDtypeStruct((Mp, N), out_dtype),
        grid=(Mp // tm,),
        in_specs=[
            pl.BlockSpec((tm, K), lambda i: (i, 0)),   # row tile of activations
            pl.BlockSpec((K, N), lambda i: (0, 0)),    # full (small) weight
            pl.BlockSpec((1, N), lambda i: (0, 0)),    # folded BN bias
        ],
        out_specs=pl.BlockSpec((tm, N), lambda i: (i, 0)),
        compiler_params=pltpu.CompilerParams(
            dimension_semantics=("parallel",)),
    )(x2d, w, b)
    return out[:M] if Mp != M else out


# ---------------------------------------------------------------------------
# Layer wrappers (NHWC activations, bf16 between layers).
# ---------------------------------------------------------------------------
def conv1x1_bn_act(x, w, b, act):
    """ConvBNLayer(filter_size=1, stride=1) + act.  x: (N,H,W,Cin), w: (Cin,Cout)."""
    N, H, W, Cin = x.shape
    Cout = w.shape[1]
    y = matmul_bias_act(x.reshape(N * H * W, Cin), w, b, act)
    return y.reshape(N, H, W, Cout)


def conv3x3_s2_bn_act(x, w, b, act):
    """ConvBNLayer(filter_size=3, stride=2, padding=1) + act.
    im2col (stride-2 tap extraction) is XLA-side glue; the Pallas kernel then
    does a single (rows, 9*Cin) x (9*Cin, Cout) matmul."""
    N, H, W, Cin = x.shape
    Cout = w.shape[-1]
    xp = jnp.pad(x, ((0, 0), (1, 1), (1, 1), (0, 0)))
    Ho = (H - 1) // 2 + 1
    Wo = (W - 1) // 2 + 1
    cols = []
    for kh in range(3):
        for kw in range(3):
            cols.append(xp[:, kh:kh + 2 * Ho:2, kw:kw + 2 * Wo:2, :])
    patches = jnp.concatenate(cols, axis=-1)          # (N, Ho, Wo, 9*Cin), (kh,kw,cin)
    w2 = w.reshape(9 * Cin, Cout)                     # matches (kh,kw,cin) ordering
    y = matmul_bias_act(patches.reshape(N * Ho * Wo, 9 * Cin), w2, b, act)
    return y.reshape(N, Ho, Wo, Cout)


def upsample2x_nearest(x):
    """F.interpolate(scale_factor=2.0) nearest, NHWC."""
    N, H, W, C = x.shape
    x = jnp.broadcast_to(x[:, :, None, :, None, :], (N, H, 2, W, 2, C))
    return x.reshape(N, 2 * H, 2 * W, C)


# ---------------------------------------------------------------------------
# Parameter construction (Conv weights with BN already folded in -> w, b).
# ---------------------------------------------------------------------------
def _conv_params(key, cin, cout, k=1):
    kw_, kb_ = jax.random.split(key)
    if k == 1:
        w = jax.random.normal(kw_, (cin, cout), jnp.float32) / jnp.sqrt(float(cin))
    else:
        w = jax.random.normal(kw_, (k, k, cin, cout), jnp.float32) / jnp.sqrt(float(k * k * cin))
    b = jax.random.normal(kb_, (cout,), jnp.float32) * 0.01
    return {"w": w, "b": b}


def init_csppan_params(key, in_channels, out_channels, width_mult=1.0):
    out_channels = [max(round(c * width_mult), 1) for c in out_channels]
    num_blocks = len(in_channels)
    in_rev = in_channels[::-1]

    fpn_stages, fpn_routes = [], []
    ch_pre = None
    for i, (ch_in, ch_out) in enumerate(zip(in_rev, out_channels)):
        if i > 0:
            ch_in += ch_pre // 2
        key, k1 = jax.random.split(key)
        # TODO(synk): CSPStage/BasicBlock bodies undefined in spec; modeled as
        # a single folded Conv1x1+BN+act mapping ch_in -> ch_out.
        fpn_stages.append(_conv_params(k1, ch_in, ch_out, k=1))
        if i < num_blocks - 1:
            key, k2 = jax.random.split(key)
            fpn_routes.append(_conv_params(k2, ch_out, ch_out // 2, k=1))
        ch_pre = ch_out

    pan_stages, pan_routes = [], []
    for i in reversed(range(num_blocks - 1)):
        key, k3, k4 = jax.random.split(key, 3)
        pan_routes.append(_conv_params(k3, out_channels[i + 1], out_channels[i + 1], k=3))
        pan_stages.append(_conv_params(k4, out_channels[i] + out_channels[i + 1],
                                       out_channels[i], k=1))
    return {
        "fpn_stages": fpn_stages,
        "fpn_routes": fpn_routes,
        "pan_stages": pan_stages[::-1],
        "pan_routes": pan_routes[::-1],
        "num_blocks": num_blocks,
        "out_channels": out_channels,
    }


# ---------------------------------------------------------------------------
# CustomCSPPAN.forward
# ---------------------------------------------------------------------------
def custom_csppan_forward(blocks_nchw, params, act="leaky"):
    """blocks_nchw: [C3, C4, C5] NCHW feats.  Returns pan_feats[::-1] as NCHW."""
    num_blocks = params["num_blocks"]
    # NCHW -> NHWC (channels on lanes), bf16 inter-layer activations.
    blocks = [jnp.transpose(b, (0, 2, 3, 1)).astype(jnp.bfloat16) for b in blocks_nchw]

    blocks = blocks[::-1]                                   # [C5, C4, C3]
    fpn_feats = []
    route = None
    for i, block in enumerate(blocks):
        if i > 0:
            block = jnp.concatenate([route, block], axis=-1)
        p = params["fpn_stages"][i]
        route = conv1x1_bn_act(block, p["w"], p["b"], act)
        fpn_feats.append(route)
        if i < num_blocks - 1:
            r = params["fpn_routes"][i]
            route = conv1x1_bn_act(route, r["w"], r["b"], act)
            route = upsample2x_nearest(route)

    pan_feats = [fpn_feats[-1]]
    route = fpn_feats[-1]
    for i in reversed(range(num_blocks - 1)):
        block = fpn_feats[i]
        r = params["pan_routes"][i]
        route = conv3x3_s2_bn_act(route, r["w"], r["b"], act)
        block = jnp.concatenate([route, block], axis=-1)
        p = params["pan_stages"][i]
        route = conv1x1_bn_act(block, p["w"], p["b"], act)
        pan_feats.append(route)

    pan_feats = pan_feats[::-1]
    # back to NCHW, f32 outputs
    return tuple(jnp.transpose(f, (0, 3, 1, 2)).astype(jnp.float32) for f in pan_feats)


if __name__ == "__main__":
    key = jax.random.PRNGKey(0)
    kx, kp = jax.random.split(key)
    k1, k2, k3 = jax.random.split(kx, 3)

    # Small multi-scale blocks (NCHW), consistent with the module's contract:
    # in_channels=[16, 32, 64] for [C3, C4, C5], out_channels=[64, 32, 16].
    in_channels = [16, 32, 64]
    out_channels = [64, 32, 16]
    blocks = [
        jax.random.normal(k1, (2, 16, 16, 16), jnp.float32),   # C3 (largest spatial)
        jax.random.normal(k2, (2, 32, 8, 8), jnp.float32),     # C4
        jax.random.normal(k3, (2, 64, 4, 4), jnp.float32),     # C5 (smallest spatial)
    ]
    params = init_csppan_params(kp, in_channels, out_channels)

    feats = custom_csppan_forward(blocks, params, act="leaky")
    feats = jax.block_until_ready(feats)

    expected = [(2, 64, 4, 4), (2, 32, 8, 8), (2, 16, 16, 16)]
    assert [tuple(f.shape) for f in feats] == expected, [tuple(f.shape) for f in feats]
    assert all(bool(jnp.isfinite(f).all()) for f in feats)
    print("KERNEL_OK")
</pallas_src>

<mosaic_0001>
module attributes {stable_mosaic.version = 11 : i64} {
  func.func @_mm_bias_act_kernel(%arg0: i32, %arg1: memref<32x64xbf16, #tpu.memory_space<vmem>>, %arg2: memref<64x64xbf16, #tpu.memory_space<vmem>>, %arg3: memref<1x64xf32, #tpu.memory_space<vmem>>, %arg4: memref<32x64xbf16, #tpu.memory_space<vmem>>) attributes {dimension_semantics = [#tpu.dimension_semantics<parallel>], iteration_bounds = array<i64: 1>, scalar_prefetch = 0 : i64, scratch_operands = 0 : i64, tpu.core_type = #tpu.core_type<tc>, window_params = [{transform_indices = @transform_0, window_bounds = array<i64: 32, 64>}, {pipeline_mode = #tpu.pipeline_mode<synchronous>, transform_indices = @transform_1, window_bounds = array<i64: 64, 64>}, {pipeline_mode = #tpu.pipeline_mode<synchronous>, transform_indices = @transform_2, window_bounds = array<i64: 1, 64>}, {transform_indices = @transform_3, window_bounds = array<i64: 32, 64>}]} {
    %c0 = arith.constant 0 : index
    %c0_0 = arith.constant 0 : index
    %0 = vector.load %arg1[%c0, %c0_0] : memref<32x64xbf16, #tpu.memory_space<vmem>>, vector<32x64xbf16>
    %c0_1 = arith.constant 0 : index
    %c0_2 = arith.constant 0 : index
    %1 = vector.load %arg2[%c0_1, %c0_2] : memref<64x64xbf16, #tpu.memory_space<vmem>>, vector<64x64xbf16>
    %cst = arith.constant dense<0.000000e+00> : vector<32x64xf32>
    %2 = tpu.matmul %0, %1, %cst {dimension_numbers = #tpu.dot_dimension_numbers<[1], [0], [0], [1], [0, 0, 1, 1], [], []>} : vector<32x64xbf16>, vector<64x64xbf16>, vector<32x64xf32> -> vector<32x64xf32>
    %c0_3 = arith.constant 0 : index
    %c0_4 = arith.constant 0 : index
    %3 = vector.load %arg3[%c0_3, %c0_4] : memref<1x64xf32, #tpu.memory_space<vmem>>, vector<1x64xf32>
    %4 = vector.broadcast %3 : vector<1x64xf32> to vector<32x64xf32>
    %5 = arith.addf %2, %4 : vector<32x64xf32>
    %cst_5 = arith.constant 0.000000e+00 : f32
    %6 = vector.broadcast %cst_5 : f32 to vector<32x64xf32>
    %7 = arith.cmpf oge, %5, %6 : vector<32x64xf32>
    %cst_6 = arith.constant 0.00999999977 : f32
    %8 = vector.broadcast %cst_6 : f32 to vector<32x64xf32>
    %9 = arith.mulf %8, %5 : vector<32x64xf32>
    %10 = arith.select %7, %5, %9 : vector<32x64xi1>, vector<32x64xf32>
    %11 = arith.truncf %10 : vector<32x64xf32> to vector<32x64xbf16>
    %c0_7 = arith.constant 0 : index
    %c0_8 = arith.constant 0 : index
    %12 = vector.load %arg4[%c0_7, %c0_8] : memref<32x64xbf16, #tpu.memory_space<vmem>>, vector<32x64xbf16>
    tpu.vector_store %arg4[%c0_7, %c0_8], %11 {strides = array<i32>} : memref<32x64xbf16, #tpu.memory_space<vmem>>, vector<32x64xbf16>,
    return
  }
  func.func @transform_0(%arg0: i32) -> (i32, i32) {
    %c0_i32 = arith.constant 0 : i32
    %c0_i32_0 = arith.constant 0 : i32
    return %arg0, %c0_i32 : i32, i32
  }
  func.func @transform_1(%arg0: i32) -> (i32, i32) {
    %c0_i32 = arith.constant 0 : i32
    %c0_i32_0 = arith.constant 0 : i32
    %c0_i32_1 = arith.constant 0 : i32
    return %c0_i32, %c0_i32_0 : i32, i32
  }
  func.func @transform_2(%arg0: i32) -> (i32, i32) {
    %c0_i32 = arith.constant 0 : i32
    %c0_i32_0 = arith.constant 0 : i32
    %c0_i32_1 = arith.constant 0 : i32
    return %c0_i32, %c0_i32_0 : i32, i32
  }
  func.func @transform_3(%arg0: i32) -> (i32, i32) {
    %c0_i32 = arith.constant 0 : i32
    %c0_i32_0 = arith.constant 0 : i32
    return %arg0, %c0_i32 : i32, i32
  }
}

</mosaic_0001>

<bundles_post_ra>
// kernel: tpu_custom_call.1
= control target key start
LH: loop header
LB: loop body
LE: loop exit
PB: predicated region body
PF: predicated region fallthrough
CT: control target
= control target key end

     0   :  { %8 = vsyncpa [#allocation3], 0  ;;  %s366_s0 = inlined_call_operand.hbm [shape: bf16[32,64], index: 0, kind: input, shape index: {}]   ;;  %s367_s1 = inlined_call_operand.hbm [shape: bf16[64,64], index: 1, kind: input, shape index: {}]   ;;  %s368_s2 = inlined_call_operand.vmem [shape: f32[1,64], index: 2, kind: input, shape index: {}]   ;;  %s369_s3 = inlined_call_operand.hbm [shape: bf16[32,64], index: 3, kind: output, shape index: {}]  }
   0x1   :  { %9 = vsyncpa [#allocation6], 0 }
   0x2   :  { %10 = vsyncpa [#allocation4], 0  ;;  %s316_s12 = smov [#allocation2]  }
   0x3   :  { %s16_s13 = sshll.u32 %s316_s12, 4  ;;  %s17_s13 = int_to_ptr.vmem [resolvable:$true] %s16_s13 }
   0x4   :  { %s258_s14 = scalar_lea.vmem %s17_s13, 256  ;;  %p263_p1 = scmp.lt.s32.totalorder %s17_s13, %s17_s13 }
   0x5   :  { %p259_p0 = scmp.ne.s32.totalorder %s17_s13, %s258_s14  ;;  %p264_p2 = scmp.lt.s32.totalorder %s258_s14, %s258_s14 }
   0x7   :  { %p265_p3 = por %p264_p2, %p263_p1 }
   0x9   :  { %p266_p4 = pnand %p265_p3, %p259_p0 }
   0xb   :  { %269 = shalt.err (!%p266_p4)
}
   0xc   :  { %s317_s15 = smov 64   ;;  %s318_s16 = smov 4  }
   0xd   :  { %22 = dma.hbm_to_vmem [thread:$0]  %s366_s0, 256, %s17_s13, [#allocation3], %s317_s15, %s317_s15, %s318_s16  }
   0xe   :  { %s319_s19 = smov [#allocation5]  }
   0xf   :  { %s28_s20 = sshll.u32 %s319_s19, 4  ;;  %s29_s20 = int_to_ptr.vmem [resolvable:$true] %s28_s20 }
  0x10   :  { %s278_s21 = scalar_lea.vmem %s29_s20, 512  ;;  %p283_p6 = scmp.lt.s32.totalorder %s29_s20, %s29_s20 }
  0x11   :  { %p279_p5 = scmp.ne.s32.totalorder %s29_s20, %s278_s21  ;;  %p284_p7 = scmp.lt.s32.totalorder %s278_s21, %s278_s21 }
  0x13   :  { %p285_p8 = por %p284_p7, %p283_p6 }
  0x15   :  { %p286_p9 = pnand %p285_p8, %p279_p5 }
  0x17   :  { %289 = shalt.err (!%p286_p9)
}
  0x18   :  { %34 = dma.hbm_to_vmem [thread:$0]  %s367_s1, 512, %s29_s20, [#allocation6], %s317_s15, %s317_s15, %s318_s16  }
  0x19   :  { %310 = dma.done.wait [#allocation3], 256  }
  0x1a   :  { %311 = vsyncadd [#allocation3], 4294967040 }
  0x1b   :  { %312 = dma.done.wait [#allocation6], 512  }
  0x1c   :  { %313 = vsyncadd [#allocation6], 4294966784  ;;  %v244_v0 = vld [vmem:[#allocation5 + $0x18] sm:$0xff]   ;;  %v245_v1 = vld [vmem:[#allocation5 + $0x10] sm:$0xff]   ;;  %vm97_vm0 = vcmask 523264   ;;  %vm181_vm2 = vcmask 519168  }
  0x1d   :  { %227 = vmatprep.subr.bf16.mxu0 %v244_v0  ;;  %v246_v2 = vld [vmem:[#allocation5 + $0x8] sm:$0xff]   ;;  %v248_v3 = vld [vmem:[#allocation2] sm:$0xff]   ;;  %v247_v4 = vld [vmem:[#allocation5] sm:$0xff]  }
  0x1e   :  { %228 = vmatpush3.bf16.msra.mxu0 %v244_v0  ;;  %235 = vmatprep.mubr.msk.bf16.mxu0 %vm97_vm0, %v248_v3  ;;  %v249_v5 = vld [vmem:[#allocation2 + $0x8] sm:$0xff]   ;;  %v204_v6 = vld [vmem:[%s368_s2] ss:$0 sm:$0xff]  ;;  %s320_s2 = smov [#allocation7]  }
  0x1f   :  { %229 = vmatprep.subr.bf16.mxu0 %v245_v1  ;;  %s191_s24 = sshll.u32 %s320_s2, 4  ;;  %s192_s24 = int_to_ptr.vmem [resolvable:$true] %s191_s24 }
  0x20   :  { %s290_s25 = scalar_lea.vmem %s192_s24, 256  ;;  %p295_p11 = scmp.lt.s32.totalorder %s192_s24, %s192_s24 }
  0x21   :  { %p291_p10 = scmp.ne.s32.totalorder %s192_s24, %s290_s25  ;;  %p296_p12 = scmp.lt.s32.totalorder %s290_s25, %s290_s25 }
  0x22   :  { %230 = vmatpush3.bf16.msra.mxu0 %v245_v1 }
  0x23   :  { %231 = vmatprep.subr.bf16.mxu0 %v246_v2  ;;  %p297_p13 = por %p296_p12, %p295_p11 }
  0x25   :  { %p298_p0 = pnand %p297_p13, %p291_p10 }
  0x26   :  { %232 = vmatpush3.bf16.msra.mxu0 %v246_v2 }
  0x27   :  { %233 = vmatprep.subr.bf16.mxu0 %v247_v4 }
  0x2a   :  { %234 = vmatpush3.bf16.msra.mxu0 %v247_v4 }
  0x2d   :  { %236 = vmatmul.mubr.msk.bf16.vlgmr.msra.gmra.mxu0 %vm97_vm0, %v249_v5 }
  0xed   :  { %v237_v7 = vpop.f32.mrf.mxu0 }
  0xee   :  { %v147_v8 = vadd.f32 %v237_v7, %v204_v6 }
  0xef   :  { %v138_v9 = vpop.f32.mrf.mxu0 }
  0xf0   :  { %vm155_vm1 = vcmp.ge.f32.partialorder %v147_v8, 0.0  ;;  %v159_v10 = vmul.f32 0.01, %v147_v8  ;;  %v139_v11 = vadd.f32 %v204_v6, %v138_v9 }
  0xf1   :  { %v238_v12 = vpop.f32.mrf.mxu0 }
  0xf2   :  { %v163_v13 = vsel %vm155_vm1, %v147_v8, %v159_v10  ;;  %vm153_vm3 = vcmp.ge.f32.partialorder %v139_v11, 0.0  ;;  %v157_v14 = vmul.f32 0.01, %v139_v11  ;;  %v150_v15 = vadd.f32 %v238_v12, %v204_v6 }
  0xf3   :  { %v219_v16 = vpack.c.bf16 %v163_v13, %v163_v13  ;;  %v141_v17 = vpop.f32.mrf.mxu0 }
  0xf4   :  { %v161_v18 = vsel %vm153_vm3, %v139_v11, %v157_v14  ;;  %vm156_vm4 = vcmp.ge.f32.partialorder %v150_v15, 0.0  ;;  %v160_v19 = vmul.f32 0.01, %v150_v15  ;;  %v142_v20 = vadd.f32 %v204_v6, %v141_v17 }
  0xf5   :  { %v217_v21 = vpack.c.bf16 %v161_v18, %v161_v18  ;;  %184 = vst.msk [vmem:[#allocation7 + $0x8] sm:$0xf] %vm181_vm2, %v219_v16 }
  0xf6   :  { %v164_v22 = vsel %vm156_vm4, %v150_v15, %v160_v19  ;;  %vm154_vm5 = vcmp.ge.f32.partialorder %v142_v20, 0.0  ;;  %v158_v23 = vmul.f32 0.01, %v142_v20 }
  0xf7   :  { %v220_v24 = vpack.c.bf16 %v164_v22, %v164_v22  ;;  %182 = vst.msk [vmem:[#allocation7] sm:$0xf] %vm181_vm2, %v217_v21 }
  0xf8   :  { %v162_v25 = vsel %vm154_vm5, %v142_v20, %v158_v23 }
  0xf9   :  { %v218_v26 = vpack.c.bf16 %v162_v25, %v162_v25  ;;  %185 = vst.msk [vmem:[#allocation7 + $0xc] sm:$0xf] %vm181_vm2, %v220_v24 }
  0xfb   :  { %183 = vst.msk [vmem:[#allocation7 + $0x4] sm:$0xf] %vm181_vm2, %v218_v26 }
  0xfc   :  { %301 = shalt.err (!%p298_p0)
}
  0xfd   :  { %197 = dma.vmem_to_hbm [thread:$0]  %s192_s24, 256, %s369_s3, [#allocation4], %s317_s15, %s317_s15, %s318_s16  }
  0xfe   :  { %314 = dma.done.wait [#allocation4], 256  }
  0xff   :  { %315 = vsyncadd [#allocation4], 4294967040 }
 0x100   :  { %201 = vsyncpa [#allocation3], 1 }
 0x101   :  { %202 = vsyncpa [#allocation6], 1 }
 0x102   :  { %203 = vsyncpa [#allocation4], 1 }

</bundles_post_ra>
